<compile_context>
chip_gen: v7x
topology: tpu7x:2x2x1
jax: 0.10.0
libtpu: 0.0.40
codegen_flags: <defaults>
</compile_context>

<pallas_src>
from functools import partial

import jax
import jax.numpy as jnp
import numpy as np
from jax.experimental import pallas as pl
from jax.experimental.pallas import tpu as pltpu


def _resblock_kernel(x_ref, w1_ref, t1_ref, w2_ref, t2_ref, m_ref, o_ref, *,
                     H, W, NB, compute_dtype):
    PW = W + 2                    # padded width (1 pad col each side)
    L = (H + 2) * PW              # per-image padded-grid length
    LC = H * PW                   # per-image output slab (rows 1..H, all PW cols)
    LR = L + 2 * PW + 2           # per-image lane stride of patch/P/h1/Q slabs
    LS = NB * LR - 2 * PW         # h1 slab length (NB images at stride LR)
    LS2 = LS - 2                  # Q slab length
    OFF = 2 * PW                  # flat index of grid position 0 inside x buffer

    xs = [x_ref[b] for b in range(NB)]            # NB x (CP, LX), f32
    mask = m_ref[...]                             # (1, LS) validity mask for h1
    t1 = t1_ref[...]                              # (CP, 1) folded bias+BN
    t2 = t2_ref[...]

    # ---- conv1 + folded BN1 + ReLU --------------------------------------
    # One 3*CP-row patch (three kw-shifted copies of x, all NB images side by
    # side on lanes), reused by the three per-kh matmuls; the kh row offset is
    # applied to the CP-row matmul outputs before accumulating in f32.
    xcat = jnp.concatenate(
        [jnp.concatenate(
            [xs[b][:, OFF - PW - 2 + kw: OFF - PW - 2 + kw + LR]
             for b in range(NB)], axis=1)
         for kw in range(3)], axis=0).astype(compute_dtype)      # (3CP, NB*LR)

    acc = None
    for kh in range(3):
        p = jnp.dot(w1_ref[kh].astype(compute_dtype), xcat,
                    preferred_element_type=jnp.float32)          # (CP, NB*LR)
        p = p[:, kh * PW: kh * PW + LS]                          # kh lane shift
        acc = p if acc is None else acc + p
    h1 = jnp.maximum(acc + t1, 0.0) * mask                       # (CP, LS)

    # ---- conv2 + folded BN2 (same structure, on the in-register h1 slab) --
    h1c = h1.astype(compute_dtype)
    h1cat = jnp.concatenate([h1c[:, kw: kw + LS2] for kw in range(3)],
                            axis=0)                              # (3CP, LS2)
    q = [jnp.dot(w2_ref[kh].astype(compute_dtype), h1cat,
                 preferred_element_type=jnp.float32)             # (CP, LS2)
         for kh in range(3)]

    # ---- residual add + ReLU, compact per-image output -------------------
    for b in range(NB):
        base = b * LR
        h2 = (q[0][:, base: base + LC]
              + q[1][:, base + PW: base + PW + LC]
              + q[2][:, base + 2 * PW: base + 2 * PW + LC] + t2)
        res = xs[b][:, OFF + PW: OFF + PW + LC]                  # residual rows 1..H
        o_ref[b] = jnp.maximum(h2 + res, 0.0)


def residual_block(x_nchw, w1, b1, bn1, w2, b2, bn2, *, eps=1e-5,
                   compute_dtype=jnp.float32):
    """ResidualBlock.forward (with_residual=True, with_batchnorm=True, eval-mode BN).

    compute_dtype=jnp.bfloat16 enables bf16 MXU inputs (f32 accumulation) on
    v6e/v7x; default is f32 for strict numerical parity with the reference.
    """
    N, C, H, W = x_nchw.shape
    assert w1.shape[0] == C and w2.shape[0] == C, "projection path not supported"

    CP = max(8, -(-C // 8) * 8)   # pad channels to a full sublane tile
    PW = W + 2
    L = (H + 2) * PW
    LC = H * PW
    LX = (H + 6) * PW             # 3 pad rows each side -> >= PW+2 lane slack per side
    LR = L + 2 * PW + 2

    # Pick the batch block: largest divisor of N whose live set stays small.
    per_img_bytes = 4 * CP * (LX + LC + 12 * LR)   # rough in-kernel live estimate
    NB = 1
    for nb in range(min(N, 8), 0, -1):
        if N % nb == 0 and nb * per_img_bytes <= (6 << 20):
            NB = nb
            break
    LS = NB * LR - 2 * PW

    # Fold conv bias + eval-mode BatchNorm into per-kh weight matrices
    # (CP, 3*CP, columns ordered kw-major / input-channel-minor to match the
    # patch row order) and one per-channel bias column.
    def fold(w, b, bn):
        s = bn["gamma"] / jnp.sqrt(bn["var"] + eps)                 # (C,)
        t = b * s + bn["beta"] - s * bn["mean"]                     # (C,)
        wf = (w * s[:, None, None, None]).astype(jnp.float32)       # (C,C,3,3) OIHW
        wf = jnp.pad(wf, ((0, CP - C), (0, CP - C), (0, 0), (0, 0)))
        wk = jnp.stack(
            [jnp.concatenate([wf[:, :, kh, kw] for kw in range(3)], axis=1)
             for kh in range(3)], axis=0)                           # (3, CP, 3CP)
        tb = jnp.pad(t, (0, CP - C)).reshape(CP, 1).astype(jnp.float32)
        return wk, tb

    w1s, t1b = fold(w1, b1, bn1)
    w2s, t2b = fold(w2, b2, bn2)

    # NCHW stays NCHW: pad channels to CP, rows by (3,3), cols by (1,1), then
    # flatten the padded spatial grid onto the lane axis.
    xp = jnp.pad(x_nchw.astype(jnp.float32),
                 ((0, 0), (0, CP - C), (3, 3), (1, 1)))
    x_flat = xp.reshape(N, CP, LX)

    # h1 validity mask over the batched slab: 1 at valid (non-pad) positions of
    # each image's window, 0 at pad rows/cols and inter-image slack.
    c = np.arange(LS)
    j = c - (c // LR) * LR
    qpos = j - 1
    r, col = qpos // PW, qpos % PW
    mask = ((qpos >= 0) & (r >= 1) & (r <= H) & (col >= 1) & (col <= W))
    mask = jnp.asarray(mask.astype(np.float32).reshape(1, LS))

    kernel = partial(_resblock_kernel, H=H, W=W, NB=NB,
                     compute_dtype=compute_dtype)
    out_flat = pl.pallas_call(
        kernel,
        out_shape=jax.ShapeDtypeStruct((N, CP, LC), jnp.float32),
        grid_spec=pltpu.PrefetchScalarGridSpec(
            num_scalar_prefetch=0,
            grid=(N // NB,),
            in_specs=[
                pl.BlockSpec((NB, CP, LX), lambda g: (g, 0, 0)),    # input slabs
                # TODO(synk): for large C, single-buffer these constant blocks
                #   (pl.Buffered(1) or a one-shot scratch DMA) to save VMEM.
                pl.BlockSpec((3, CP, 3 * CP), lambda g: (0, 0, 0)),  # conv1 weights
                pl.BlockSpec((CP, 1), lambda g: (0, 0)),             # conv1 bias
                pl.BlockSpec((3, CP, 3 * CP), lambda g: (0, 0, 0)),  # conv2 weights
                pl.BlockSpec((CP, 1), lambda g: (0, 0)),             # conv2 bias
                pl.BlockSpec((1, LS), lambda g: (0, 0)),             # h1 mask
            ],
            out_specs=pl.BlockSpec((NB, CP, LC), lambda g: (g, 0, 0)),
        ),
        compiler_params=pltpu.CompilerParams(
            dimension_semantics=("parallel",),
            vmem_limit_bytes=48 * 1024 * 1024,
        ),
    )(x_flat, w1s, t1b, w2s, t2b, mask)

    # (N, CP, H*PW) -> (N, CP, H, PW) -> drop channel padding & pad columns.
    out = out_flat.reshape(N, CP, H, PW)[:, :C, :, 1:W + 1]
    return out


def _reference(x, w1, b1, bn1, w2, b2, bn2, eps=1e-5):
    """Pure-JAX reference mirroring the PyTorch forward (eval-mode BN)."""
    def conv(y, w, b):
        z = jax.lax.conv_general_dilated(
            y, w, window_strides=(1, 1), padding=((1, 1), (1, 1)),
            dimension_numbers=("NCHW", "OIHW", "NCHW"))
        return z + b[None, :, None, None]

    def bn(y, p):
        scale = p["gamma"] / jnp.sqrt(p["var"] + eps)
        shift = p["beta"] - scale * p["mean"]
        return y * scale[None, :, None, None] + shift[None, :, None, None]

    out = jax.nn.relu(bn(conv(x, w1, b1), bn1))
    out = bn(conv(out, w2, b2), bn2)
    return jax.nn.relu(x + out)


if __name__ == "__main__":
    key = jax.random.PRNGKey(0)
    ks = jax.random.split(key, 10)

    N, C, H, W = 2, 4, 16, 16
    x = jax.random.normal(ks[0], (N, C, H, W), jnp.float32)

    # Deterministic synthetic parameters (shapes per nn.Conv2d / nn.BatchNorm2d).
    w1 = 0.2 * jax.random.normal(ks[1], (C, C, 3, 3), jnp.float32)
    b1 = 0.1 * jax.random.normal(ks[2], (C,), jnp.float32)
    w2 = 0.2 * jax.random.normal(ks[3], (C, C, 3, 3), jnp.float32)
    b2 = 0.1 * jax.random.normal(ks[4], (C,), jnp.float32)
    bn1 = dict(gamma=1.0 + 0.1 * jax.random.normal(ks[5], (C,), jnp.float32),
               beta=0.1 * jax.random.normal(ks[6], (C,), jnp.float32),
               mean=0.1 * jax.random.normal(ks[7], (C,), jnp.float32),
               var=0.5 + jnp.abs(jax.random.normal(ks[8], (C,), jnp.float32)))
    bn2 = dict(gamma=1.0 + 0.1 * jax.random.normal(ks[9], (C,), jnp.float32),
               beta=jnp.linspace(-0.1, 0.1, C, dtype=jnp.float32),
               mean=jnp.linspace(-0.05, 0.05, C, dtype=jnp.float32),
               var=jnp.linspace(0.8, 1.2, C, dtype=jnp.float32))

    out = residual_block(x, w1, b1, bn1, w2, b2, bn2)
    out = jax.block_until_ready(out)

    ref = jax.block_until_ready(_reference(x, w1, b1, bn1, w2, b2, bn2))
    np.testing.assert_allclose(np.asarray(out), np.asarray(ref), rtol=1e-4, atol=1e-4)

    print("KERNEL_OK")
</pallas_src>

<mosaic_0001>
module attributes {stable_mosaic.version = 11 : i64} {
  func.func @_resblock_kernel(%arg0: i32, %arg1: memref<2x8x396xf32, #tpu.memory_space<vmem>>, %arg2: memref<3x8x24xf32, #tpu.memory_space<vmem>>, %arg3: memref<8x1xf32, #tpu.memory_space<vmem>>, %arg4: memref<3x8x24xf32, #tpu.memory_space<vmem>>, %arg5: memref<8x1xf32, #tpu.memory_space<vmem>>, %arg6: memref<1x688xf32, #tpu.memory_space<vmem>>, %arg7: memref<2x8x288xf32, #tpu.memory_space<vmem>>) attributes {dimension_semantics = [#tpu.dimension_semantics<parallel>], iteration_bounds = array<i64: 1>, scalar_prefetch = 0 : i64, scratch_operands = 0 : i64, tpu.core_type = #tpu.core_type<tc>, window_params = [{transform_indices = @transform_0, window_bounds = array<i64: 2, 8, 396>}, {pipeline_mode = #tpu.pipeline_mode<synchronous>, transform_indices = @transform_1, window_bounds = array<i64: 3, 8, 24>}, {pipeline_mode = #tpu.pipeline_mode<synchronous>, transform_indices = @transform_2, window_bounds = array<i64: 8, 1>}, {pipeline_mode = #tpu.pipeline_mode<synchronous>, transform_indices = @transform_3, window_bounds = array<i64: 3, 8, 24>}, {pipeline_mode = #tpu.pipeline_mode<synchronous>, transform_indices = @transform_4, window_bounds = array<i64: 8, 1>}, {pipeline_mode = #tpu.pipeline_mode<synchronous>, transform_indices = @transform_5, window_bounds = array<i64: 1, 688>}, {transform_indices = @transform_6, window_bounds = array<i64: 2, 8, 288>}]} {
    %c0 = arith.constant 0 : index
    %c0_0 = arith.constant 0 : index
    %c0_1 = arith.constant 0 : index
    %0 = vector.load %arg1[%c0, %c0_0, %c0_1] : memref<2x8x396xf32, #tpu.memory_space<vmem>>, vector<1x8x396xf32>
    %1 = vector.shape_cast %0 : vector<1x8x396xf32> to vector<8x396xf32>
    %c1 = arith.constant 1 : index
    %c0_2 = arith.constant 0 : index
    %c0_3 = arith.constant 0 : index
    %2 = vector.load %arg1[%c1, %c0_2, %c0_3] : memref<2x8x396xf32, #tpu.memory_space<vmem>>, vector<1x8x396xf32>
    %3 = vector.shape_cast %2 : vector<1x8x396xf32> to vector<8x396xf32>
    %c0_4 = arith.constant 0 : index
    %c0_5 = arith.constant 0 : index
    %4 = vector.load %arg6[%c0_4, %c0_5] : memref<1x688xf32, #tpu.memory_space<vmem>>, vector<1x688xf32>
    %c0_6 = arith.constant 0 : index
    %c0_7 = arith.constant 0 : index
    %5 = vector.load %arg3[%c0_6, %c0_7] : memref<8x1xf32, #tpu.memory_space<vmem>>, vector<8x1xf32>
    %c0_8 = arith.constant 0 : index
    %c0_9 = arith.constant 0 : index
    %6 = vector.load %arg5[%c0_8, %c0_9] : memref<8x1xf32, #tpu.memory_space<vmem>>, vector<8x1xf32>
    %7 = vector.extract_strided_slice %1 {offsets = [0, 16], sizes = [8, 362], strides = [1, 1]} : vector<8x396xf32> to vector<8x362xf32>
    %8 = vector.extract_strided_slice %3 {offsets = [0, 16], sizes = [8, 362], strides = [1, 1]} : vector<8x396xf32> to vector<8x362xf32>
    %9 = tpu.concatenate %7, %8 in 1 : vector<8x362xf32>, vector<8x362xf32> -> vector<8x724xf32>
    %10 = vector.extract_strided_slice %1 {offsets = [0, 17], sizes = [8, 362], strides = [1, 1]} : vector<8x396xf32> to vector<8x362xf32>
    %11 = vector.extract_strided_slice %3 {offsets = [0, 17], sizes = [8, 362], strides = [1, 1]} : vector<8x396xf32> to vector<8x362xf32>
    %12 = tpu.concatenate %10, %11 in 1 : vector<8x362xf32>, vector<8x362xf32> -> vector<8x724xf32>
    %13 = vector.extract_strided_slice %1 {offsets = [0, 18], sizes = [8, 362], strides = [1, 1]} : vector<8x396xf32> to vector<8x362xf32>
    %14 = vector.extract_strided_slice %3 {offsets = [0, 18], sizes = [8, 362], strides = [1, 1]} : vector<8x396xf32> to vector<8x362xf32>
    %15 = tpu.concatenate %13, %14 in 1 : vector<8x362xf32>, vector<8x362xf32> -> vector<8x724xf32>
    %16 = tpu.concatenate %9, %12, %15 in 0 : vector<8x724xf32>, vector<8x724xf32>, vector<8x724xf32> -> vector<24x724xf32>
    %c0_10 = arith.constant 0 : index
    %c0_11 = arith.constant 0 : index
    %c0_12 = arith.constant 0 : index
    %17 = vector.load %arg2[%c0_10, %c0_11, %c0_12] : memref<3x8x24xf32, #tpu.memory_space<vmem>>, vector<1x8x24xf32>
    %18 = vector.shape_cast %17 : vector<1x8x24xf32> to vector<8x24xf32>
    %cst = arith.constant dense<0.000000e+00> : vector<8x724xf32>
    %19 = tpu.matmul %18, %16, %cst {dimension_numbers = #tpu.dot_dimension_numbers<[1], [0], [0], [1], [0, 0, 1, 1], [], []>} : vector<8x24xf32>, vector<24x724xf32>, vector<8x724xf32> -> vector<8x724xf32>
    %20 = vector.extract_strided_slice %19 {offsets = [0, 0], sizes = [8, 688], strides = [1, 1]} : vector<8x724xf32> to vector<8x688xf32>
    %c1_13 = arith.constant 1 : index
    %c0_14 = arith.constant 0 : index
    %c0_15 = arith.constant 0 : index
    %21 = vector.load %arg2[%c1_13, %c0_14, %c0_15] : memref<3x8x24xf32, #tpu.memory_space<vmem>>, vector<1x8x24xf32>
    %22 = vector.shape_cast %21 : vector<1x8x24xf32> to vector<8x24xf32>
    %cst_16 = arith.constant dense<0.000000e+00> : vector<8x724xf32>
    %23 = tpu.matmul %22, %16, %cst_16 {dimension_numbers = #tpu.dot_dimension_numbers<[1], [0], [0], [1], [0, 0, 1, 1], [], []>} : vector<8x24xf32>, vector<24x724xf32>, vector<8x724xf32> -> vector<8x724xf32>
    %24 = vector.extract_strided_slice %23 {offsets = [0, 18], sizes = [8, 688], strides = [1, 1]} : vector<8x724xf32> to vector<8x688xf32>
    %25 = arith.addf %20, %24 : vector<8x688xf32>
    %c2 = arith.constant 2 : index
    %c0_17 = arith.constant 0 : index
    %c0_18 = arith.constant 0 : index
    %26 = vector.load %arg2[%c2, %c0_17, %c0_18] : memref<3x8x24xf32, #tpu.memory_space<vmem>>, vector<1x8x24xf32>
    %27 = vector.shape_cast %26 : vector<1x8x24xf32> to vector<8x24xf32>
    %cst_19 = arith.constant dense<0.000000e+00> : vector<8x724xf32>
    %28 = tpu.matmul %27, %16, %cst_19 {dimension_numbers = #tpu.dot_dimension_numbers<[1], [0], [0], [1], [0, 0, 1, 1], [], []>} : vector<8x24xf32>, vector<24x724xf32>, vector<8x724xf32> -> vector<8x724xf32>
    %29 = vector.extract_strided_slice %28 {offsets = [0, 36], sizes = [8, 688], strides = [1, 1]} : vector<8x724xf32> to vector<8x688xf32>
    %30 = arith.addf %25, %29 : vector<8x688xf32>
    %31 = vector.broadcast %5 : vector<8x1xf32> to vector<8x688xf32>
    %32 = arith.addf %30, %31 : vector<8x688xf32>
    %cst_20 = arith.constant 0.000000e+00 : f32
    %33 = vector.broadcast %cst_20 : f32 to vector<8x688xf32>
    %34 = arith.maximumf %32, %33 : vector<8x688xf32>
    %35 = vector.broadcast %4 : vector<1x688xf32> to vector<8x688xf32>
    %36 = arith.mulf %34, %35 : vector<8x688xf32>
    %37 = vector.extract_strided_slice %36 {offsets = [0, 0], sizes = [8, 686], strides = [1, 1]} : vector<8x688xf32> to vector<8x686xf32>
    %38 = vector.extract_strided_slice %36 {offsets = [0, 1], sizes = [8, 686], strides = [1, 1]} : vector<8x688xf32> to vector<8x686xf32>
    %39 = vector.extract_strided_slice %36 {offsets = [0, 2], sizes = [8, 686], strides = [1, 1]} : vector<8x688xf32> to vector<8x686xf32>
    %40 = tpu.concatenate %37, %38, %39 in 0 : vector<8x686xf32>, vector<8x686xf32>, vector<8x686xf32> -> vector<24x686xf32>
    %c0_21 = arith.constant 0 : index
    %c0_22 = arith.constant 0 : index
    %c0_23 = arith.constant 0 : index
    %41 = vector.load %arg4[%c0_21, %c0_22, %c0_23] : memref<3x8x24xf32, #tpu.memory_space<vmem>>, vector<1x8x24xf32>
    %42 = vector.shape_cast %41 : vector<1x8x24xf32> to vector<8x24xf32>
    %cst_24 = arith.constant dense<0.000000e+00> : vector<8x686xf32>
    %43 = tpu.matmul %42, %40, %cst_24 {dimension_numbers = #tpu.dot_dimension_numbers<[1], [0], [0], [1], [0, 0, 1, 1], [], []>} : vector<8x24xf32>, vector<24x686xf32>, vector<8x686xf32> -> vector<8x686xf32>
    %c1_25 = arith.constant 1 : index
    %c0_26 = arith.constant 0 : index
    %c0_27 = arith.constant 0 : index
    %44 = vector.load %arg4[%c1_25, %c0_26, %c0_27] : memref<3x8x24xf32, #tpu.memory_space<vmem>>, vector<1x8x24xf32>
    %45 = vector.shape_cast %44 : vector<1x8x24xf32> to vector<8x24xf32>
    %cst_28 = arith.constant dense<0.000000e+00> : vector<8x686xf32>
    %46 = tpu.matmul %45, %40, %cst_28 {dimension_numbers = #tpu.dot_dimension_numbers<[1], [0], [0], [1], [0, 0, 1, 1], [], []>} : vector<8x24xf32>, vector<24x686xf32>, vector<8x686xf32> -> vector<8x686xf32>
    %c2_29 = arith.constant 2 : index
    %c0_30 = arith.constant 0 : index
    %c0_31 = arith.constant 0 : index
    %47 = vector.load %arg4[%c2_29, %c0_30, %c0_31] : memref<3x8x24xf32, #tpu.memory_space<vmem>>, vector<1x8x24xf32>
    %48 = vector.shape_cast %47 : vector<1x8x24xf32> to vector<8x24xf32>
    %cst_32 = arith.constant dense<0.000000e+00> : vector<8x686xf32>
    %49 = tpu.matmul %48, %40, %cst_32 {dimension_numbers = #tpu.dot_dimension_numbers<[1], [0], [0], [1], [0, 0, 1, 1], [], []>} : vector<8x24xf32>, vector<24x686xf32>, vector<8x686xf32> -> vector<8x686xf32>
    %50 = vector.extract_strided_slice %43 {offsets = [0, 0], sizes = [8, 288], strides = [1, 1]} : vector<8x686xf32> to vector<8x288xf32>
    %51 = vector.extract_strided_slice %46 {offsets = [0, 18], sizes = [8, 288], strides = [1, 1]} : vector<8x686xf32> to vector<8x288xf32>
    %52 = arith.addf %50, %51 : vector<8x288xf32>
    %53 = vector.extract_strided_slice %49 {offsets = [0, 36], sizes = [8, 288], strides = [1, 1]} : vector<8x686xf32> to vector<8x288xf32>
    %54 = arith.addf %52, %53 : vector<8x288xf32>
    %55 = vector.broadcast %6 : vector<8x1xf32> to vector<8x288xf32>
    %56 = arith.addf %54, %55 : vector<8x288xf32>
    %57 = vector.extract_strided_slice %1 {offsets = [0, 54], sizes = [8, 288], strides = [1, 1]} : vector<8x396xf32> to vector<8x288xf32>
    %58 = arith.addf %56, %57 : vector<8x288xf32>
    %cst_33 = arith.constant 0.000000e+00 : f32
    %59 = vector.broadcast %cst_33 : f32 to vector<8x288xf32>
    %60 = arith.maximumf %58, %59 : vector<8x288xf32>
    %c0_34 = arith.constant 0 : index
    %c0_35 = arith.constant 0 : index
    %c0_36 = arith.constant 0 : index
    %61 = vector.load %arg7[%c0_34, %c0_35, %c0_36] : memref<2x8x288xf32, #tpu.memory_space<vmem>>, vector<1x8x288xf32>
    %62 = vector.shape_cast %61 : vector<1x8x288xf32> to vector<8x288xf32>
    %63 = vector.shape_cast %60 : vector<8x288xf32> to vector<1x8x288xf32>
    tpu.vector_store %arg7[%c0_34, %c0_35, %c0_36], %63 {strides = array<i32>} : memref<2x8x288xf32, #tpu.memory_space<vmem>>, vector<1x8x288xf32>,
    %64 = vector.extract_strided_slice %43 {offsets = [0, 362], sizes = [8, 288], strides = [1, 1]} : vector<8x686xf32> to vector<8x288xf32>
    %65 = vector.extract_strided_slice %46 {offsets = [0, 380], sizes = [8, 288], strides = [1, 1]} : vector<8x686xf32> to vector<8x288xf32>
    %66 = arith.addf %64, %65 : vector<8x288xf32>
    %67 = vector.extract_strided_slice %49 {offsets = [0, 398], sizes = [8, 288], strides = [1, 1]} : vector<8x686xf32> to vector<8x288xf32>
    %68 = arith.addf %66, %67 : vector<8x288xf32>
    %69 = vector.broadcast %6 : vector<8x1xf32> to vector<8x288xf32>
    %70 = arith.addf %68, %69 : vector<8x288xf32>
    %71 = vector.extract_strided_slice %3 {offsets = [0, 54], sizes = [8, 288], strides = [1, 1]} : vector<8x396xf32> to vector<8x288xf32>
    %72 = arith.addf %70, %71 : vector<8x288xf32>
    %cst_37 = arith.constant 0.000000e+00 : f32
    %73 = vector.broadcast %cst_37 : f32 to vector<8x288xf32>
    %74 = arith.maximumf %72, %73 : vector<8x288xf32>
    %c1_38 = arith.constant 1 : index
    %c0_39 = arith.constant 0 : index
    %c0_40 = arith.constant 0 : index
    %75 = vector.load %arg7[%c1_38, %c0_39, %c0_40] : memref<2x8x288xf32, #tpu.memory_space<vmem>>, vector<1x8x288xf32>
    %76 = vector.shape_cast %75 : vector<1x8x288xf32> to vector<8x288xf32>
    %77 = vector.shape_cast %74 : vector<8x288xf32> to vector<1x8x288xf32>
    tpu.vector_store %arg7[%c1_38, %c0_39, %c0_40], %77 {strides = array<i32>} : memref<2x8x288xf32, #tpu.memory_space<vmem>>, vector<1x8x288xf32>,
    return
  }
  func.func @transform_0(%arg0: i32) -> (i32, i32, i32) {
    %c0_i32 = arith.constant 0 : i32
    %c0_i32_0 = arith.constant 0 : i32
    %c0_i32_1 = arith.constant 0 : i32
    return %arg0, %c0_i32, %c0_i32_0 : i32, i32, i32
  }
  func.func @transform_1(%arg0: i32) -> (i32, i32, i32) {
    %c0_i32 = arith.constant 0 : i32
    %c0_i32_0 = arith.constant 0 : i32
    %c0_i32_1 = arith.constant 0 : i32
    %c0_i32_2 = arith.constant 0 : i32
    return %c0_i32, %c0_i32_0, %c0_i32_1 : i32, i32, i32
  }
  func.func @transform_2(%arg0: i32) -> (i32, i32) {
    %c0_i32 = arith.constant 0 : i32
    %c0_i32_0 = arith.constant 0 : i32
    %c0_i32_1 = arith.constant 0 : i32
    return %c0_i32, %c0_i32_0 : i32, i32
  }
  func.func @transform_3(%arg0: i32) -> (i32, i32, i32) {
    %c0_i32 = arith.constant 0 : i32
    %c0_i32_0 = arith.constant 0 : i32
    %c0_i32_1 = arith.constant 0 : i32
    %c0_i32_2 = arith.constant 0 : i32
    return %c0_i32, %c0_i32_0, %c0_i32_1 : i32, i32, i32
  }
  func.func @transform_4(%arg0: i32) -> (i32, i32) {
    %c0_i32 = arith.constant 0 : i32
    %c0_i32_0 = arith.constant 0 : i32
    %c0_i32_1 = arith.constant 0 : i32
    return %c0_i32, %c0_i32_0 : i32, i32
  }
  func.func @transform_5(%arg0: i32) -> (i32, i32) {
    %c0_i32 = arith.constant 0 : i32
    %c0_i32_0 = arith.constant 0 : i32
    %c0_i32_1 = arith.constant 0 : i32
    return %c0_i32, %c0_i32_0 : i32, i32
  }
  func.func @transform_6(%arg0: i32) -> (i32, i32, i32) {
    %c0_i32 = arith.constant 0 : i32
    %c0_i32_0 = arith.constant 0 : i32
    %c0_i32_1 = arith.constant 0 : i32
    return %arg0, %c0_i32, %c0_i32_0 : i32, i32, i32
  }
}

</mosaic_0001>

<bundles_post_ra>
// kernel: tpu_custom_call.1
= control target key start
LH: loop header
LB: loop body
LE: loop exit
PB: predicated region body
PF: predicated region fallthrough
CT: control target
= control target key end

     0   :  { %11 = vsyncpa [#allocation3], 0  ;;  %s2309_s0 = inlined_call_operand.hbm [shape: f32[2,8,396], index: 0, kind: input, shape index: {}]   ;;  %s2310_s1 = inlined_call_operand.hbm [shape: f32[3,8,24], index: 1, kind: input, shape index: {}]   ;;  %s2311_s2 = inlined_call_operand.vmem [shape: f32[8,1], index: 2, kind: input, shape index: {}]   ;;  %s2312_s3 = inlined_call_operand.vmem [shape: f32[3,8,24], index: 3, kind: input, shape index: {}]   ;;  %s2313_s4 = inlined_call_operand.vmem [shape: f32[8,1], index: 4, kind: input, shape index: {}]   ;;  %s2314_s5 = inlined_call_operand.vmem [shape: f32[1,688], index: 5, kind: input, shape index: {}]   ;;  %s2315_s6 = inlined_call_operand.hbm [shape: f32[2,8,288], index: 6, kind: output, shape index: {}]  }
   0x1   :  { %12 = vsyncpa [#allocation6], 0 }
   0x2   :  { %13 = vsyncpa [#allocation4], 0  ;;  %s2026_s21 = smov [#allocation2]   ;;  %s1954_s25 = scalar_lea.hbm %s2309_s0, 1024 }
   0x3   :  { %s19_s22 = sshll.u32 %s2026_s21, 4  ;;  %p1955_p0 = scmp.ne.s32.totalorder %s2309_s0, %s1954_s25  ;;  %s20_s22 = int_to_ptr.vmem [resolvable:$true] %s19_s22 }
   0x4   :  { %p1958_p1 = scmp.lt.u32.totalorder %s1954_s25, %s2309_s0 }
   0x6   :  { %p1960_p2 = pnand %p1958_p1, %p1955_p0 }
   0x8   :  { %1963 = shalt.err (!%p1960_p2)
}
   0x9   :  { %s1964_s30 = scalar_lea.vmem %s20_s22, 1024  ;;  %p1969_p4 = scmp.lt.s32.totalorder %s20_s22, %s20_s22 }
   0xa   :  { %p1965_p3 = scmp.ne.s32.totalorder %s20_s22, %s1964_s30  ;;  %p1970_p5 = scmp.lt.s32.totalorder %s1964_s30, %s1964_s30 }
   0xc   :  { %p1971_p6 = por %p1970_p5, %p1969_p4 }
   0xe   :  { %p1972_p7 = pnand %p1971_p6, %p1965_p3 }
  0x10   :  { %1975 = shalt.err (!%p1972_p7)
}
  0x11   :  { %s2027_s7 = smov 512   ;;  %s2028_s8 = smov 32  }
  0x12   :  { %25 = dma.hbm_to_vmem [thread:$0]  %s2309_s0, 1024, %s20_s22, [#allocation3], %s2027_s7, %s2027_s7, %s2028_s8  }
  0x13   :  { %s2029_s11 = smov [#allocation5]   ;;  %s1976_s15 = scalar_lea.hbm %s2310_s1, 384 }
  0x14   :  { %s31_s12 = sshll.u32 %s2029_s11, 4  ;;  %p1977_p8 = scmp.ne.s32.totalorder %s2310_s1, %s1976_s15  ;;  %s32_s12 = int_to_ptr.vmem [resolvable:$true] %s31_s12 }
  0x15   :  { %p1980_p9 = scmp.lt.u32.totalorder %s1976_s15, %s2310_s1 }
  0x17   :  { %p1982_p10 = pnand %p1980_p9, %p1977_p8 }
  0x19   :  { %1985 = shalt.err (!%p1982_p10)
}
  0x1a   :  { %s1986_s20 = scalar_lea.vmem %s32_s12, 384  ;;  %p1991_p12 = scmp.lt.s32.totalorder %s32_s12, %s32_s12 }
  0x1b   :  { %p1987_p11 = scmp.ne.s32.totalorder %s32_s12, %s1986_s20  ;;  %p1992_p13 = scmp.lt.s32.totalorder %s1986_s20, %s1986_s20 }
  0x1d   :  { %p1993_p0 = por %p1992_p13, %p1991_p12 }
  0x1f   :  { %p1994_p1 = pnand %p1993_p0, %p1987_p11 }
  0x21   :  { %1997 = shalt.err (!%p1994_p1)
}
  0x22   :  { %s2030_s0 = smov 128   ;;  %s2031_s21 = smov 8  }
  0x23   :  { %37 = dma.hbm_to_vmem [thread:$0]  %s2310_s1, 384, %s32_s12, [#allocation6], %s2030_s0, %s2030_s0, %s2031_s21  }
  0x24   :  { %2020 = dma.done.wait [#allocation3], 1024  }
  0x25   :  { %2021 = vsyncadd [#allocation3], 4294966272 }
  0x26   :  { %2022 = dma.done.wait [#allocation6], 384  }
  0x27   :  { %2023 = vsyncadd [#allocation6], 4294966912  ;;  %v2108_v0 = vld [vmem:[#allocation2 + $0x8] sm:$0xff]  ;;  %v2110_v1 = vld [vmem:[#allocation2 + $0x10] sm:$0xff]  ;;  %s2032_s24 = smov 111   ;;  %s2033_s25 = smov 112  }
  0x28   :  { %v2112_v2 = vld [vmem:[#allocation2 + $0x20] sm:$0xff]  ;;  %v1927_v3 = vpack.i.bf16 %v2110_v1, %v2108_v0  ;;  %v2116_v4 = vld [vmem:[#allocation2 + $0x28] sm:$0xff]  ;;  %s2034_s1 = smov 89   ;;  %s2035_s26 = smov 90   ;;  %v2036_v7 = vmov 0.0   ;;  %v2132_v8 = vld [vmem:[#allocation2 + $0x30] sm:$0xff] }
  0x29   :  { %v1932_v5 = vpack.i.bf16 %v2116_v4, %v2112_v2  ;;  %v2120_v6 = vld [vmem:[#allocation2] sm:$0xff]  ;;  %287 = vmatprep.mubr.f32.mxu1 %v2036_v7  ;;  %216 = vmatprep.mubr.f32.mxu0 %v2036_v7  ;;  %s2037_s27 = smov 110   ;;  %s2038_s28 = smov 88   ;;  %v2039_v10 = vmov 0   ;;  %vm71_vm0 = vcmask 916480   ;;  %vm101_vm1 = vcmask 908288  }
  0x2a   :  { %1928 = vrot.lane.b32.xlu1 %v1927_v3, %s2032_s24  ;;  %1918 = vrot.lane.b32.xlu0 %v1927_v3, %s2033_s25  ;;  %v60_v9 = vld [vmem:[%s2311_s2] sm:$0xff]  ;;  %vm86_vm2 = vcmask 736256   ;;  %vm113_vm3 = vcmask 728064   ;;  %vm93_vm4 = vcmask 867328   ;;  %vm127_vm5 = vcmask 900096   ;;  %v366_v52 = vld [vmem:[#allocation5 + $0x8] sm:$0xff] }
  0x2b   :  { %1937 = vset.pattern.permute.xlu0 %v2039_v10  ;;  %1953 = vset.pattern.permute.xlu1 %v2039_v10  ;;  %vm139_vm6 = vcmask 719872   ;;  %v147_v44 = vld [vmem:[#allocation5] sm:$0xff]  ;;  %vm148_vm7 = vcmask 195584   ;;  %v619_v56 = vld [vmem:[#allocation5 + $0x10] sm:$0xff]  ;;  %s2040_s2 = smov 92   ;;  %vm854_vm8 = vcmask 752640  }
  0x2c   :  { %s2042_s9 = smov 126   ;;  %vm944_vm9 = vcmask 1039360   ;;  %vm968_vm10 = vcmask 1031168   ;;  %s2044_s17 = smov 74   ;;  %vm1746_vm11 = vcmask 424960   ;;  %vm1681_vm12 = vcmask 605184  }
  0x2d   :  { %s2045_s18 = smov 22   ;;  %vm1695_vm13 = vcmask 261120   ;;  %vm1773_vm14 = vcmask 179200   ;;  %s2046_s19 = smov [#allocation7]  }
  0x2e   :  { %1933 = vrot.lane.b32.xlu1 %v1932_v5, %s2034_s1  ;;  %1923 = vrot.lane.b32.xlu0 %v1932_v5, %s2035_s26  ;;  %s1789_s20 = sshll.u32 %s2046_s19, 4  ;;  %s1790_s20 = int_to_ptr.vmem [resolvable:$true] %s1789_s20 }
  0x2f   :  { %s1998_s0 = scalar_lea.vmem %s1790_s20, 768  ;;  %p2003_p3 = scmp.lt.s32.totalorder %s1790_s20, %s1790_s20 }
  0x30   :  { %p1999_p2 = scmp.ne.s32.totalorder %s1790_s20, %s1998_s0  ;;  %p2004_p4 = scmp.lt.s32.totalorder %s1998_s0, %s1998_s0 }
  0x32   :  { %95 = vrot.lane.b32.xlu1 %v2120_v6, %s2032_s24  ;;  %65 = vrot.lane.b32.xlu0 %v2120_v6, %s2033_s25  ;;  %p2005_p5 = por %p2004_p4, %p2003_p3 }
  0x34   :  { %p2006_p6 = pnand %p2005_p5, %p1999_p2 }
  0x36   :  { %125 = vrot.lane.b32.xlu1 %v2110_v1, %s2037_s27  ;;  %123 = vrot.lane.b32.xlu0 %v2108_v0, %s2037_s27 }
  0x3a   :  { %135 = vrot.lane.b32.xlu1 %v2116_v4, %s2038_s28  ;;  %133 = vrot.lane.b32.xlu0 %v2112_v2, %s2038_s28 }
  0x3e   :  { %111 = vrot.lane.b32.xlu1 %v2132_v8, %s2034_s1  ;;  %84 = vrot.lane.b32.xlu0 %v2132_v8, %s2035_s26 }
  0x42   :  { %137 = vrot.lane.b32.xlu1 %v2132_v8, %s2038_s28  ;;  %121 = vrot.lane.b32.xlu0 %v2120_v6, %s2037_s27 }
  0x46   :  { %874 = vperm.xlu0 %1937, %v60_v9  }
  0x9c   :  { %v1929_v11 = vpop.permute.xlu1 %1928  ;;  %v1919_v12 = vpop.permute.xlu0 %1918 }
  0x9d   :  { %v1931_v13 = vunpack.i.h.bf16 %v1929_v11  ;;  %v1930_v14 = vunpack.i.l.bf16 %v1929_v11  ;;  %v1921_v15 = vunpack.i.h.bf16 %v1919_v12  ;;  %v1920_v16 = vunpack.i.l.bf16 %v1919_v12 }
  0x9f   :  { %v73_v17 = vsel %vm71_vm0, %v1920_v16, %v1921_v15  ;;  %v103_v18 = vsel %vm101_vm1, %v1930_v14, %v1931_v13 }
  0xa0   :  { %v1934_v19 = vpop.permute.xlu1 %1933  ;;  %v1924_v20 = vpop.permute.xlu0 %1923  ;;  %v2144_v21 = vpack.c.bf16 %v103_v18, %v73_v17 }
  0xa1   :  { %v1936_v22 = vunpack.i.h.bf16 %v1934_v19  ;;  %v1935_v23 = vunpack.i.l.bf16 %v1934_v19  ;;  %v1926_v24 = vunpack.i.h.bf16 %v1924_v20  ;;  %v1925_v25 = vunpack.i.l.bf16 %v1924_v20 }
  0xa2   :  { %1823 = vmatprep.subr.bf16.mxu0 %v2144_v21 }
  0xa3   :  { %v87_v26 = vsel %vm86_vm2, %v1925_v25, %v1926_v24  ;;  %v114_v27 = vsel %vm113_vm3, %v1935_v23, %v1936_v22  ;;  %v94_v28 = vsel %vm93_vm4, %v1921_v15, %v1925_v25  ;;  %v120_v29 = vsel %vm93_vm4, %v1931_v13, %v1935_v23 }
  0xa4   :  { %v96_v30 = vpop.permute.xlu1 %95  ;;  %v66_v31 = vpop.permute.xlu0 %65  ;;  %v1826_v32 = vpack.c.bf16 %v114_v27, %v87_v26  ;;  %v1828_v33 = vpack.c.bf16 %v120_v29, %v94_v28 }
  0xa5   :  { %v102_v34 = vsel %vm101_vm1, %v96_v30, %v1930_v14  ;;  %v72_v35 = vsel %vm71_vm0, %v66_v31, %v1920_v16 }
  0xa6   :  { %v1824_v36 = vpack.c.bf16 %v102_v34, %v72_v35  ;;  %1827 = vmatprep.subr.bf16.mxu1 %v1826_v32 }
  0xa7   :  { %1829 = vmatpush1.bf16.msra.mxu1 %v1828_v33 }
  0xa8   :  { %v126_v37 = vpop.permute.xlu1 %125  ;;  %1825 = vmatpush1.bf16.msra.mxu0 %v1824_v36  ;;  %v124_v38 = vpop.permute.xlu0 %123 }
  0xa9   :  { %v129_v39 = vsel %vm127_vm5, %v124_v38, %v126_v37 }
  0xaa   :  { %156 = vmatprep.subr.mxu0 %v129_v39 }
  0xac   :  { %v136_v40 = vpop.permute.xlu1 %135  ;;  %v134_v41 = vpop.permute.xlu0 %133 }
  0xad   :  { %v140_v42 = vsel %vm139_vm6, %v134_v41, %v136_v40  ;;  %v146_v43 = vsel %vm93_vm4, %v126_v37, %v134_v41 }
  0xae   :  { %227 = vmatprep.subr.mxu1 %v140_v42 }
  0xaf   :  { %228 = vmatpush1.msra.mxu1 %v146_v43 }
  0xb0   :  { %1835 = vmatprep.subr.bf16.mxu1 %v2144_v21  ;;  %v85_v45 = vpop.permute.xlu0 %84  ;;  %1803 = vmatmul.mubr.msk.f32.vlgmr.msra.gmra.mrb[0].mxu1 %vm148_vm7, %v147_v44  ;;  %v112_v46 = vpop.permute.xlu1 %111 }
  0xb1   :  { %1837 = vmatpush1.bf16.msra.mxu1 %v1824_v36  ;;  %434 = vmatprep.mubr.f32.mxu1 %v2036_v7  ;;  %v115_v47 = vsel %vm113_vm3, %v1936_v22, %v112_v46  ;;  %v88_v48 = vsel %vm86_vm2, %v1926_v24, %v85_v45  ;;  %v1830_v50 = vpack.c.bf16 %v112_v46, %v85_v45  ;;  %v890_v22 = vlaneseq }
  0xb2   :  { %374 = vmatprep.subr.mxu1 %v129_v39  ;;  %v1832_v53 = vpack.c.bf16 %v115_v47, %v88_v48 }
  0xb3   :  { %v891_v26 = vshrl.u32 %v890_v22, 7 }
  0xb4   :  { %v122_v49 = vpop.permute.xlu0 %121  ;;  %v138_v54 = vpop.permute.xlu1 %137 }
  0xb5   :  { %v128_v51 = vsel %vm127_vm5, %v122_v49, %v124_v38  ;;  %v141_v55 = vsel %vm139_vm6, %v136_v40, %v138_v54  ;;  %v896_v34 = vsub.s32 1, %v891_v26 }
  0xb6   :  { %157 = vmatpush1.msra.mxu0 %v128_v51  ;;  %375 = vmatpush1.msra.mxu1 %v128_v51 }
  0xb7   :  { %1802 = vmatmul.mubr.msk.f32.vlgmr.msra.gmra.mrb[0].mxu0 %vm148_vm7, %v147_v44  ;;  %1831 = vmatprep.subr.bf16.mxu0 %v1830_v50 }
  0xb8   :  { %1805 = vmatmul.mubr.msk.f32.vlgmr.msra.gmra.mrb[2].mxu1 %vm148_vm7, %v366_v52  ;;  %1843 = vmatprep.subr.bf16.mxu1 %v1830_v50 }
  0xb9   :  { %1833 = vmatpush1.bf16.msra.mxu0 %v1832_v53  ;;  %1845 = vmatpush1.bf16.msra.mxu1 %v1832_v53 }
  0xba   :  { %298 = vmatprep.subr.mxu0 %v138_v54  ;;  %516 = vmatprep.subr.mxu1 %v138_v54 }
  0xbb   :  { %358 = vmatprep.mubr.f32.mxu0 %v2036_v7  ;;  %576 = vmatprep.mubr.f32.mxu1 %v2036_v7 }
  0xbd   :  { %299 = vmatpush1.msra.mxu0 %v141_v55  ;;  %517 = vmatpush1.msra.mxu1 %v141_v55 }
  0xbe   :  { %1804 = vmatmul.mubr.msk.f32.vlgmr.msra.gmra.mrb[2].mxu0 %vm148_vm7, %v147_v44  ;;  %1839 = vmatprep.subr.bf16.mxu0 %v1826_v32 }
  0xbf   :  { %1851 = vmatprep.subr.bf16.mxu1 %v1826_v32  ;;  %1841 = vmatpush1.bf16.msra.mxu0 %v1828_v33 }
  0xc0   :  { %1807 = vmatmul.mubr.msk.f32.vlgmr.msra.gmra.mrb[4].mxu1 %vm148_vm7, %v366_v52  ;;  %445 = vmatprep.subr.mxu0 %v140_v42 }
  0xc1   :  { %1853 = vmatpush1.bf16.msra.mxu1 %v1828_v33  ;;  %505 = vmatprep.mubr.f32.mxu0 %v2036_v7 }
  0xc2   :  { %698 = vmatprep.subr.mxu1 %v140_v42  ;;  %758 = vmatprep.mubr.f32.mxu1 %v2036_v7 }
  0xc3   :  { %446 = vmatpush1.msra.mxu0 %v146_v43 }
  0xc4   :  { %1806 = vmatmul.mubr.msk.f32.vlgmr.msra.gmra.mrb[4].mxu0 %vm148_vm7, %v366_v52  ;;  %1847 = vmatprep.subr.bf16.mxu0 %v2144_v21 }
  0xc5   :  { %699 = vmatpush1.msra.mxu1 %v146_v43  ;;  %1849 = vmatpush1.bf16.msra.mxu0 %v1824_v36  ;;  %v875_v20 = vpop.permute.xlu0 %874  ;;  %v59_v36 = vld [vmem:[%s2314_s5] sm:$0x3f]  ;;  %s2041_s5 = smov 127  }
  0xc6   :  { %627 = vmatprep.subr.mxu0 %v129_v39  ;;  %1809 = vmatmul.mubr.msk.f32.vlgmr.msra.gmra.mrb[6].mxu1 %vm148_vm7, %v619_v56  ;;  %v900_v39 = vsub.s32 2, %v891_v26  ;;  %v897_v45 = vrot.slane %v59_v36, %v896_v34 }
  0xc7   :  { %687 = vmatprep.mubr.f32.mxu0 %v2036_v7  ;;  %1048 = vmatprep.mubr.f32.mxu1 %v2036_v7 }
  0xc8   :  { %v901_v48 = vrot.slane %v59_v36, %v900_v39 }
  0xc9   :  { %628 = vmatpush1.msra.mxu0 %v128_v51 }
  0xca   :  { %1808 = vmatmul.mubr.msk.f32.vlgmr.msra.gmra.mrb[6].mxu0 %vm148_vm7, %v619_v56  ;;  %1855 = vmatprep.subr.bf16.mxu0 %v1830_v50 }
  0xcb   :  { %1857 = vmatpush1.bf16.msra.mxu0 %v1832_v53  ;;  %829 = vmatprep.mubr.f32.mxu0 %v2036_v7 }
  0xcc   :  { %769 = vmatprep.subr.mxu0 %v138_v54 }
  0xcf   :  { %770 = vmatpush1.msra.mxu0 %v141_v55  ;;  %v892_v55 = vsub.s32 0, %v891_v26 }
  0xd0   :  { %1810 = vmatmul.mubr.msk.f32.vlgmr.msra.gmra.mrb[8].mxu0 %vm148_vm7, %v619_v56 }
  0xd1   :  { %1119 = vmatprep.mubr.f32.mxu0 %v2036_v7 }
 0x183   :  { %v289_v57 = vpop.f32.mrb[0].mxu1 }
 0x184   :  { %v2180_v58 = vpop.f32.mrb[1].mxu1 }
 0x18a   :  { %v218_v59 = vpop.f32.mrb[0].mxu0 }
 0x18b   :  { %v436_v60 = vpop.f32.mrb[2].mxu1  ;;  %v220_v61 = vpop.f32.mrb[1].mxu0 }
 0x18c   :  { %589 = vrot.lane.b32.xlu1 %v436_v60, %s2037_s27  ;;  %v438_v62 = vpop.f32.mrb[3].mxu1 }
 0x190   :  { %591 = vrot.lane.b32.xlu1 %v438_v62, %s2037_s27  ;;  %v904_v62 = vsub.s32 3, %v891_v26 }
 0x191   :  { %v2184_v63 = vpop.f32.mrb[2].mxu0 }
 0x192   :  { %v362_v3 = vpop.f32.mrb[3].mxu0 }
 0x193   :  { %v578_v5 = vpop.f32.mrb[4].mxu1 }
 0x194   :  { %v580_v9 = vpop.f32.mrb[5].mxu1 }
 0x197   :  { %v507_v10 = vpop.f32.mrb[4].mxu0 }
 0x198   :  { %593 = vrot.lane.b32.xlu1 %v507_v10, %s2037_s27  ;;  %v509_v11 = vpop.f32.mrb[5].mxu0 }
 0x199   :  { %595 = vrot.lane.b32.xlu0 %v509_v11, %s2037_s27  ;;  %v760_v12 = vpop.f32.mrb[6].mxu1 }
 0x19a   :  { %v762_v13 = vpop.f32.mrb[7].mxu1 }
 0x19c   :  { %846 = vrot.lane.b32.xlu1 %v760_v12, %s2040_s2 }
 0x19d   :  { %v689_v14 = vpop.f32.mrb[6].mxu0 }
 0x19e   :  { %v691_v15 = vpop.f32.mrb[7].mxu0 }
 0x19f   :  { %844 = vrot.lane.b32.xlu0 %v691_v15, %s2040_s2 }
 0x1a0   :  { %842 = vrot.lane.b32.xlu1 %v689_v14, %s2040_s2 }
 0x1a3   :  { %848 = vrot.lane.b32.xlu0 %v762_v13, %s2040_s2  ;;  %v831_v16 = vpop.f32.mrb[8].mxu0 }
 0x1a4   :  { %599 = vrot.lane.b32.xlu1 %v580_v9, %s2037_s27  ;;  %v833_v17 = vpop.f32.mrb[9].mxu0 }
 0x1a7   :  { %597 = vrot.lane.b32.xlu0 %v578_v5, %s2037_s27  ;;  %v908_v5 = vsub.s32 4, %v891_v26 }
 0x1a8   :  { %852 = vrot.lane.b32.xlu1 %v833_v17, %s2040_s2 }
 0x1a9   :  { %v909_v22 = vrot.slane %v59_v36, %v908_v5 }
 0x1ab   :  { %850 = vrot.lane.b32.xlu0 %v831_v16, %s2040_s2 }
 0x1fe   :  { %v590_v18 = vpop.permute.xlu1 %589 }
 0x202   :  { %v592_v19 = vpop.permute.xlu1 %591 }
 0x203   :  { %v601_v32 = vsel %vm127_vm5, %v590_v18, %v592_v19  ;;  %v893_v18 = vrot.slane %v59_v36, %v892_v55 }
 0x204   :  { %v612_v41 = vadd.f32 %v601_v32, %v218_v59 }
 0x20a   :  { %v594_v21 = vpop.permute.xlu1 %593 }
 0x20b   :  { %v596_v23 = vpop.permute.xlu0 %595  ;;  %v602_v24 = vsel %vm127_vm5, %v592_v19, %v594_v21 }
 0x20c   :  { %v613_v27 = vadd.f32 %v602_v24, %v220_v61  ;;  %v603_v29 = vsel %vm127_vm5, %v594_v21, %v596_v23  ;;  %v905_v21 = vrot.slane %v59_v36, %v904_v62 }
 0x20d   :  { %v614_v35 = vadd.f32 %v603_v29, %v289_v57  ;;  %v912_v57 = vsub.s32 5, %v891_v26 }
 0x20e   :  { %v847_v25 = vpop.permute.xlu1 %846 }
 0x20f   :  { %v913_v19 = vrot.slane %v59_v36, %v912_v57 }
 0x211   :  { %v845_v28 = vpop.permute.xlu0 %844 }
 0x212   :  { %v856_v30 = vsel %vm854_vm8, %v845_v28, %v847_v25  ;;  %v843_v31 = vpop.permute.xlu1 %842 }
 0x213   :  { %v867_v33 = vadd.f32 %v856_v30, %v613_v27  ;;  %v855_v38 = vsel %vm854_vm8, %v843_v31, %v845_v28 }
 0x214   :  { %v866_v47 = vadd.f32 %v855_v38, %v612_v41 }
 0x215   :  { %v878_v37 = vadd.f32 %v875_v20, %v867_v33  ;;  %v849_v40 = vpop.permute.xlu0 %848 }
 0x216   :  { %v857_v42 = vsel %vm854_vm8, %v847_v25, %v849_v40  ;;  %v600_v43 = vpop.permute.xlu1 %599  ;;  %v877_v61 = vadd.f32 %v875_v20, %v866_v47 }
 0x217   :  { %v868_v44 = vadd.f32 %v857_v42, %v614_v35  ;;  %v884_v46 = vmax.f32 %v878_v37, 0.0  ;;  %v617_v50 = vadd.f32 %v600_v43, %v362_v3 }
 0x219   :  { %v879_v49 = vadd.f32 %v875_v20, %v868_v44  ;;  %v598_v51 = vpop.permute.xlu0 %597  ;;  %v921_v60 = vmul.f32 %v897_v45, %v884_v46 }
 0x21a   :  { %v604_v52 = vsel %vm127_vm5, %v596_v23, %v598_v51  ;;  %v605_v53 = vsel %vm127_vm5, %v598_v51, %v600_v43  ;;  %v853_v54 = vpop.permute.xlu1 %852  ;;  %v883_v23 = vmax.f32 %v877_v61, 0.0 }
 0x21b   :  { %v885_v56 = vmax.f32 %v879_v49, 0.0  ;;  %v871_v59 = vadd.f32 %v853_v54, %v617_v50  ;;  %v615_v10 = vadd.f32 %v604_v52, %v2180_v58  ;;  %v616_v11 = vadd.f32 %v605_v53, %v2184_v63 }
 0x21c   :  { %v920_v27 = vmul.f32 %v893_v18, %v883_v23 }
 0x21d   :  { %v922_v9 = vmul.f32 %v901_v48, %v885_v56  ;;  %v882_v3 = vadd.f32 %v875_v20, %v871_v59  ;;  %v851_v12 = vpop.permute.xlu0 %850  ;;  %v980_v56 = vld [vmem:[%s2312_s3] sm:$0xff] }
 0x21e   :  { %v858_v13 = vsel %vm854_vm8, %v849_v40, %v851_v12  ;;  %v859_v14 = vsel %vm854_vm8, %v851_v12, %v853_v54 }
 0x21f   :  { %v869_v15 = vadd.f32 %v858_v13, %v615_v10  ;;  %v870_v16 = vadd.f32 %v859_v14, %v616_v11  ;;  %v1938_v17 = vpack.i.bf16 %v922_v9, %v921_v60  ;;  %v888_v24 = vmax.f32 %v882_v3, 0.0  ;;  %v1814_v11 = vld [vmem:[%s2312_s3 + $0x8] sm:$0xff]  ;;  %v1818_v3 = vld [vmem:[%s2312_s3 + $0x10] sm:$0xff]  ;;  %s2043_s3 = smov 52  }
 0x221   :  { %v880_v25 = vadd.f32 %v875_v20, %v869_v15  ;;  %v881_v26 = vadd.f32 %v875_v20, %v870_v16  ;;  %1939 = vrot.lane.b32.xlu0 %v1938_v17, %s2041_s5  ;;  %v925_v28 = vmul.f32 %v913_v19, %v888_v24  ;;  %v61_v20 = vld [vmem:[%s2313_s4] sm:$0xff] }
 0x223   :  { %v886_v58 = vmax.f32 %v880_v25, 0.0  ;;  %v887_v63 = vmax.f32 %v881_v26, 0.0 }
 0x225   :  { %v923_v29 = vmul.f32 %v905_v21, %v886_v58  ;;  %v924_v30 = vmul.f32 %v909_v22, %v887_v63  ;;  %960 = vrot.lane.b32.xlu0 %v922_v9, %s2042_s9 }
 0x227   :  { %v1948_v31 = vpack.i.bf16 %v925_v28, %v924_v30  ;;  %v1943_v32 = vpack.i.bf16 %v923_v29, %v920_v27 }
 0x229   :  { %1949 = vrot.lane.b32.xlu0 %v1948_v31, %s2041_s5  ;;  %1944 = vrot.lane.b32.xlu1 %v1943_v32, %s2041_s5 }
 0x22d   :  { %962 = vrot.lane.b32.xlu0 %v923_v29, %s2042_s9  ;;  %958 = vrot.lane.b32.xlu1 %v921_v60, %s2042_s9 }
 0x231   :  { %966 = vrot.lane.b32.xlu0 %v925_v28, %s2042_s9  ;;  %956 = vrot.lane.b32.xlu1 %v920_v27, %s2042_s9 }
 0x235   :  { %964 = vrot.lane.b32.xlu1 %v924_v30, %s2042_s9 }
 0x239   :  { %1669 = vperm.xlu1 %1953, %v61_v20  }
 0x23d   :  { %1740 = vrot.lane.b32.xlu1 %v2112_v2, %s2043_s3 }
 0x293   :  { %v1940_v33 = vpop.permute.xlu0 %1939 }
 0x294   :  { %v1942_v34 = vunpack.i.h.bf16 %v1940_v33  ;;  %v1941_v35 = vunpack.i.l.bf16 %v1940_v33 }
 0x296   :  { %v946_v36 = vsel %vm944_vm9, %v1941_v35, %v1942_v34 }
 0x297   :  { %v961_v37 = vpop.permute.xlu0 %960  ;;  %v1858_v38 = vpack.c.bf16 %v946_v36, %v921_v60 }
 0x299   :  { %1859 = vmatprep.subr.bf16.mxu1 %v1858_v38 }
 0x29b   :  { %v1945_v39 = vpop.permute.xlu1 %1944  ;;  %v1950_v40 = vpop.permute.xlu0 %1949 }
 0x29c   :  { %v1947_v41 = vunpack.i.h.bf16 %v1945_v39  ;;  %v1946_v42 = vunpack.i.l.bf16 %v1945_v39  ;;  %v1951_v43 = vunpack.i.l.bf16 %v1950_v40  ;;  %v1952_v46 = vunpack.i.h.bf16 %v1950_v40 }
 0x29e   :  { %v945_v44 = vsel %vm944_vm9, %v1946_v42, %v1941_v35  ;;  %v947_v45 = vsel %vm944_vm9, %v1942_v34, %v1947_v41  ;;  %v948_v50 = vsel %vm944_vm9, %v1947_v41, %v1951_v43  ;;  %v949_v54 = vsel %vm944_vm9, %v1951_v43, %v1952_v46 }
 0x29f   :  { %v1860_v47 = vpack.c.bf16 %v945_v44, %v920_v27  ;;  %v1864_v48 = vpack.c.bf16 %v947_v45, %v922_v9  ;;  %v959_v49 = vpop.permute.xlu1 %958  ;;  %v1862_v51 = vpack.c.bf16 %v948_v50, %v923_v29  ;;  %v963_v53 = vpop.permute.xlu0 %962  ;;  %v1866_v57 = vpack.c.bf16 %v1952_v46, %v925_v28 }
 0x2a0   :  { %v970_v52 = vsel %vm968_vm10, %v959_v49, %v961_v37  ;;  %v1868_v60 = vpack.c.bf16 %v949_v54, %v924_v30  ;;  %v971_v9 = vsel %vm968_vm10, %v961_v37, %v963_v53 }
 0x2a1   :  { %1861 = vmatpush1.bf16.msra.mxu1 %v1860_v47  ;;  %1863 = vmatprep.subr.bf16.mxu0 %v1862_v51 }
 0x2a2   :  { %988 = vmatprep.subr.mxu1 %v970_v52  ;;  %1865 = vmatpush1.bf16.msra.mxu0 %v1864_v48 }
 0x2a3   :  { %v957_v55 = vpop.permute.xlu1 %956  ;;  %v967_v61 = vpop.permute.xlu0 %966 }
 0x2a4   :  { %v969_v59 = vsel %vm968_vm10, %v957_v55, %v959_v49 }
 0x2a5   :  { %989 = vmatpush1.msra.mxu1 %v969_v59 }
 0x2a6   :  { %1867 = vmatprep.subr.bf16.mxu1 %v1866_v57  ;;  %1811 = vmatmul.mubr.msk.f32.vlgmr.msra.gmra.mrb[8].mxu1 %vm148_vm7, %v980_v56 }
 0x2a7   :  { %v965_v62 = vpop.permute.xlu1 %964  ;;  %1869 = vmatpush1.bf16.msra.mxu1 %v1868_v60  ;;  %1190 = vmatprep.mubr.f32.mxu1 %v2036_v7 }
 0x2a8   :  { %1130 = vmatprep.subr.mxu1 %v967_v61  ;;  %v972_v5 = vsel %vm968_vm10, %v963_v53, %v965_v62  ;;  %v973_v10 = vsel %vm968_vm10, %v965_v62, %v967_v61 }
 0x2a9   :  { %1059 = vmatprep.subr.mxu0 %v972_v5 }
 0x2aa   :  { %1060 = vmatpush1.msra.mxu0 %v971_v9 }
 0x2ab   :  { %1812 = vmatmul.mubr.msk.f32.vlgmr.msra.gmra.mrb[10].mxu0 %vm148_vm7, %v980_v56  ;;  %1131 = vmatpush1.msra.mxu1 %v973_v10 }
 0x2ac   :  { %1871 = vmatprep.subr.bf16.mxu0 %v1858_v38  ;;  %1875 = vmatprep.subr.bf16.mxu1 %v1862_v51 }
 0x2ad   :  { %1873 = vmatpush1.bf16.msra.mxu0 %v1860_v47  ;;  %1813 = vmatmul.mubr.msk.f32.vlgmr.msra.gmra.mrb[10].mxu1 %vm148_vm7, %v980_v56 }
 0x2ae   :  { %1206 = vmatprep.subr.mxu0 %v970_v52  ;;  %1877 = vmatpush1.bf16.msra.mxu1 %v1864_v48 }
 0x2af   :  { %1277 = vmatprep.subr.mxu1 %v972_v5  ;;  %1266 = vmatprep.mubr.f32.mxu0 %v2036_v7 }
 0x2b0   :  { %1337 = vmatprep.mubr.f32.mxu1 %v2036_v7 }
 0x2b1   :  { %1207 = vmatpush1.msra.mxu0 %v969_v59 }
 0x2b2   :  { %1815 = vmatmul.mubr.msk.f32.vlgmr.msra.gmra.mrb[12].mxu0 %vm148_vm7, %v1814_v11  ;;  %1278 = vmatpush1.msra.mxu1 %v971_v9 }
 0x2b3   :  { %1879 = vmatprep.subr.bf16.mxu0 %v1866_v57  ;;  %1816 = vmatmul.mubr.msk.f32.vlgmr.msra.gmra.mrb[12].mxu1 %vm148_vm7, %v1814_v11 }
 0x2b4   :  { %1881 = vmatpush1.bf16.msra.mxu0 %v1868_v60  ;;  %1883 = vmatprep.subr.bf16.mxu1 %v1858_v38 }
 0x2b5   :  { %1348 = vmatprep.subr.mxu0 %v967_v61  ;;  %1885 = vmatpush1.bf16.msra.mxu1 %v1860_v47 }
 0x2b6   :  { %1424 = vmatprep.subr.mxu1 %v970_v52  ;;  %1408 = vmatprep.mubr.f32.mxu0 %v2036_v7 }
 0x2b7   :  { %1484 = vmatprep.mubr.f32.mxu1 %v2036_v7 }
 0x2b8   :  { %1349 = vmatpush1.msra.mxu0 %v973_v10 }
 0x2b9   :  { %1817 = vmatmul.mubr.msk.f32.vlgmr.msra.gmra.mrb[14].mxu0 %vm148_vm7, %v1814_v11  ;;  %1425 = vmatpush1.msra.mxu1 %v969_v59 }
 0x2ba   :  { %1887 = vmatprep.subr.bf16.mxu0 %v1862_v51  ;;  %1891 = vmatprep.subr.bf16.mxu1 %v1866_v57 }
 0x2bb   :  { %1889 = vmatpush1.bf16.msra.mxu0 %v1864_v48  ;;  %1819 = vmatmul.mubr.msk.f32.vlgmr.msra.gmra.mrb[14].mxu1 %vm148_vm7, %v1818_v3 }
 0x2bc   :  { %1495 = vmatprep.subr.mxu0 %v972_v5  ;;  %1893 = vmatpush1.bf16.msra.mxu1 %v1868_v60 }
 0x2bd   :  { %1566 = vmatprep.subr.mxu1 %v967_v61  ;;  %1555 = vmatprep.mubr.f32.mxu0 %v2036_v7 }
 0x2be   :  { %1626 = vmatprep.mubr.f32.mxu1 %v2036_v7 }
 0x2bf   :  { %1496 = vmatpush1.msra.mxu0 %v971_v9 }
 0x2c0   :  { %1820 = vmatmul.mubr.msk.f32.vlgmr.msra.gmra.mrb[16].mxu0 %vm148_vm7, %v1818_v3  ;;  %1567 = vmatpush1.msra.mxu1 %v973_v10 }
 0x2c1   :  { %1821 = vmatmul.mubr.msk.f32.vlgmr.msra.gmra.mrb[16].mxu1 %vm148_vm7, %v1818_v3 }
 0x379   :  { %v2250_v12 = vpop.f32.mrb[8].mxu1 }
 0x37a   :  { %v2252_v13 = vpop.f32.mrb[9].mxu1 }
 0x37e   :  { %v2254_v14 = vpop.f32.mrb[10].mxu0 }
 0x37f   :  { %v1123_v15 = vpop.f32.mrb[11].mxu0 }
 0x380   :  { %v1192_v16 = vpop.f32.mrb[10].mxu1 }
 0x381   :  { %v1194_v17 = vpop.f32.mrb[11].mxu1 }
 0x385   :  { %v1268_v18 = vpop.f32.mrb[12].mxu0 }
 0x386   :  { %v1270_v7 = vpop.f32.mrb[13].mxu0  ;;  %v1339_v19 = vpop.f32.mrb[12].mxu1 }
 0x387   :  { %1640 = vrot.lane.b32.xlu0 %v1339_v19, %s2037_s27  ;;  %v1341_v21 = vpop.f32.mrb[13].mxu1 }
 0x388   :  { %1700 = vrot.lane.b32.xlu1 %v1341_v21, %s2037_s27 }
 0x38c   :  { %v1410_v22 = vpop.f32.mrb[14].mxu0 }
 0x38d   :  { %v1412_v23 = vpop.f32.mrb[15].mxu0  ;;  %1702 = vrot.lane.b32.xlu0 %v1410_v22, %s2037_s27 }
 0x38e   :  { %1704 = vrot.lane.b32.xlu1 %v1412_v23, %s2037_s27  ;;  %v1486_v2 = vpop.f32.mrb[14].mxu1 }
 0x38f   :  { %v1488_v24 = vpop.f32.mrb[15].mxu1 }
 0x393   :  { %v1557_v25 = vpop.f32.mrb[16].mxu0 }
 0x394   :  { %v1559_v26 = vpop.f32.mrb[17].mxu0  ;;  %v1628_v58 = vpop.f32.mrb[16].mxu1 }
 0x395   :  { %1720 = vrot.lane.b32.xlu0 %v1559_v26, %s2040_s2  ;;  %1722 = vrot.lane.b32.xlu1 %v1628_v58, %s2040_s2  ;;  %v1630_v63 = vpop.f32.mrb[17].mxu1 }
 0x399   :  { %1744 = vrot.lane.b32.xlu1 %v2132_v8, %s2043_s3  ;;  %1724 = vrot.lane.b32.xlu0 %v1630_v63, %s2040_s2  ;;  %v2273_v8 = vpop.permute.xlu1 %1669 }
 0x39d   :  { %1638 = vrot.lane.b32.xlu1 %v1270_v7, %s2037_s27  ;;  %1742 = vrot.lane.b32.xlu0 %v2116_v4, %s2043_s3  ;;  %v1741_v27 = vpop.permute.xlu1 %1740 }
 0x3a1   :  { %1655 = vrot.lane.b32.xlu1 %v1488_v24, %s2040_s2  ;;  %1636 = vrot.lane.b32.xlu0 %v1268_v18, %s2037_s27 }
 0x3a5   :  { %1653 = vrot.lane.b32.xlu0 %v1486_v2, %s2040_s2  ;;  %1675 = vrot.lane.b32.xlu1 %v2120_v6, %s2044_s17 }
 0x3a9   :  { %1657 = vrot.lane.b32.xlu0 %v1557_v25, %s2040_s2  ;;  %1679 = vrot.lane.b32.xlu1 %v2110_v1, %s2044_s17 }
 0x3ad   :  { %1677 = vrot.lane.b32.xlu0 %v2108_v0, %s2044_s17 }
 0x3f9   :  { %v1641_v28 = vpop.permute.xlu0 %1640 }
 0x3fa   :  { %v1701_v4 = vpop.permute.xlu1 %1700 }
 0x3fb   :  { %v1706_v29 = vsel %vm127_vm5, %v1641_v28, %v1701_v4 }
 0x3fc   :  { %v1713_v32 = vadd.f32 %v1706_v29, %v2254_v14 }
 0x3ff   :  { %v1703_v30 = vpop.permute.xlu0 %1702 }
 0x400   :  { %v1705_v31 = vpop.permute.xlu1 %1704  ;;  %v1707_v20 = vsel %vm127_vm5, %v1701_v4, %v1703_v30 }
 0x401   :  { %v1708_v34 = vsel %vm127_vm5, %v1703_v30, %v1705_v31  ;;  %v1714_v35 = vadd.f32 %v1707_v20, %v1123_v15  ;;  %v1716_v36 = vadd.f32 %v1705_v31, %v1194_v17 }
 0x402   :  { %v1715_v38 = vadd.f32 %v1708_v34, %v1192_v16  ;;  %v1649_v16 = vadd.f32 %v1641_v28, %v2254_v14 }
 0x407   :  { %v1721_v6 = vpop.permute.xlu0 %1720  ;;  %v1723_v33 = vpop.permute.xlu1 %1722 }
 0x408   :  { %v1732_v1 = vadd.f32 %v1721_v6, %v1713_v32  ;;  %v1726_v0 = vsel %vm854_vm8, %v1721_v6, %v1723_v33 }
 0x409   :  { %v1733_v39 = vadd.f32 %v1726_v0, %v1714_v35 }
 0x40a   :  { %v1736_v37 = vadd.f32 %v1732_v1, %v2273_v8 }
 0x40b   :  { %v1745_v40 = vpop.permute.xlu1 %1744  ;;  %v1725_v41 = vpop.permute.xlu0 %1724  ;;  %v1737_v49 = vadd.f32 %v1733_v39, %v2273_v8 }
 0x40c   :  { %v1727_v42 = vsel %vm854_vm8, %v1723_v33, %v1725_v41  ;;  %v1735_v43 = vadd.f32 %v1725_v41, %v1716_v36  ;;  %v1753_v44 = vadd.f32 %v1741_v27, %v1736_v37 }
 0x40d   :  { %v1734_v45 = vadd.f32 %v1727_v42, %v1715_v38 }
 0x40e   :  { %v1757_v46 = vmax.f32 %v1753_v44, 0.0  ;;  %v1739_v47 = vadd.f32 %v1735_v43, %v2273_v8 }
 0x40f   :  { %v1639_v48 = vpop.permute.xlu1 %1638  ;;  %v1738_v50 = vadd.f32 %v1734_v45, %v2273_v8  ;;  %v1743_v51 = vpop.permute.xlu0 %1742 }
 0x410   :  { %v1747_v52 = vsel %vm1746_vm11, %v1741_v27, %v1743_v51  ;;  %v1748_v53 = vsel %vm1746_vm11, %v1743_v51, %v1745_v40  ;;  %1765 = vrot.lane.b32.xlu0 %v1757_v46, %s2045_s18  ;;  %v1756_v61 = vadd.f32 %v1745_v40, %v1739_v47  ;;  %v1643_v11 = vsel %vm127_vm5, %v1639_v48, %v1641_v28 }
 0x411   :  { %v1754_v54 = vadd.f32 %v1747_v52, %v1737_v49  ;;  %v1755_v55 = vadd.f32 %v1748_v53, %v1738_v50  ;;  %v1648_v17 = vadd.f32 %v1643_v11, %v2252_v13 }
 0x412   :  { %v1760_v9 = vmax.f32 %v1756_v61, 0.0 }
 0x413   :  { %v1758_v56 = vmax.f32 %v1754_v54, 0.0  ;;  %v1759_v57 = vmax.f32 %v1755_v55, 0.0  ;;  %v1656_v59 = vpop.permute.xlu1 %1655  ;;  %v1637_v60 = vpop.permute.xlu0 %1636 }
 0x414   :  { %v1642_v62 = vsel %vm127_vm5, %v1637_v60, %v1639_v48 }
 0x415   :  { %1769 = vrot.lane.b32.xlu0 %v1759_v57, %s2045_s18  ;;  %1767 = vrot.lane.b32.xlu1 %v1758_v56, %s2045_s18  ;;  %v1647_v15 = vadd.f32 %v1642_v62, %v2250_v12 }
 0x417   :  { %v1654_v5 = vpop.permute.xlu0 %1653  ;;  %v1676_v10 = vpop.permute.xlu1 %1675 }
 0x418   :  { %v1659_v3 = vsel %vm854_vm8, %v1654_v5, %v1656_v59 }
 0x419   :  { %1771 = vrot.lane.b32.xlu1 %v1760_v9, %s2045_s18  ;;  %v1664_v18 = vadd.f32 %v1659_v3, %v1647_v15 }
 0x41b   :  { %v1658_v7 = vpop.permute.xlu0 %1657  ;;  %v1680_v23 = vpop.permute.xlu1 %1679  ;;  %v1672_v24 = vadd.f32 %v2273_v8, %v1664_v18 }
 0x41c   :  { %v1660_v19 = vsel %vm854_vm8, %v1656_v59, %v1658_v7  ;;  %v1666_v21 = vadd.f32 %v1658_v7, %v1649_v16 }
 0x41d   :  { %v1665_v22 = vadd.f32 %v1660_v19, %v1648_v17 }
 0x41e   :  { %v1674_v2 = vadd.f32 %v2273_v8, %v1666_v21 }
 0x41f   :  { %v1673_v25 = vadd.f32 %v2273_v8, %v1665_v22  ;;  %v1678_v12 = vpop.permute.xlu0 %1677 }
 0x420   :  { %v1689_v26 = vadd.f32 %v1680_v23, %v1674_v2  ;;  %v1682_v58 = vsel %vm1681_vm12, %v1676_v10, %v1678_v12  ;;  %v1683_v14 = vsel %vm1681_vm12, %v1678_v12, %v1680_v23 }
 0x421   :  { %v1687_v63 = vadd.f32 %v1682_v58, %v1672_v24  ;;  %v1688_v13 = vadd.f32 %v1683_v14, %v1673_v25 }
 0x422   :  { %v1692_v27 = vmax.f32 %v1689_v26, 0.0 }
 0x423   :  { %v1690_v28 = vmax.f32 %v1687_v63, 0.0  ;;  %v1691_v4 = vmax.f32 %v1688_v13, 0.0 }
 0x424   :  { %1696 = vst.msk [vmem:[#allocation7 + $0x10] sm:$0xff] %vm1695_vm13, %v1692_v27 }
 0x425   :  { %1693 = vst [vmem:[#allocation7] sm:$0xff] %v1690_v28  ;;  %1694 = vst [vmem:[#allocation7 + $0x8] sm:$0xff] %v1691_v4 }
 0x482   :  { %v1766_v29 = vpop.permute.xlu0 %1765 }
 0x487   :  { %v1768_v30 = vpop.permute.xlu1 %1767  ;;  %v1770_v31 = vpop.permute.xlu0 %1769 }
 0x488   :  { %v1774_v8 = vsel %vm1773_vm14, %v1766_v29, %v1768_v30  ;;  %v1775_v32 = vsel %vm1773_vm14, %v1768_v30, %v1770_v31 }
 0x489   :  { %1781 = vst [vmem:[#allocation7 + $0x18] sm:$0xff] %v1774_v8  ;;  %1782 = vst [vmem:[#allocation7 + $0x20] sm:$0xff] %v1775_v32 }
 0x48b   :  { %v1772_v20 = vpop.permute.xlu1 %1771 }
 0x48c   :  { %v1776_v6 = vsel %vm1773_vm14, %v1770_v31, %v1772_v20 }
 0x48d   :  { %1783 = vst.msk [vmem:[#allocation7 + $0x28] sm:$0xff] %vm1695_vm13, %v1776_v6 }
 0x48e   :  { %2009 = shalt.err (!%p2006_p6)
}
 0x48f   :  { %s2010_s23 = scalar_lea.hbm %s2315_s6, 768 }
 0x490   :  { %p2011_p7 = scmp.ne.s32.totalorder %s2315_s6, %s2010_s23  ;;  %p2014_p8 = scmp.lt.u32.totalorder %s2010_s23, %s2315_s6 }
 0x492   :  { %p2016_p9 = pnand %p2014_p8, %p2011_p7 }
 0x494   :  { %2019 = shalt.err (!%p2016_p9)
}
 0x495   :  { %s2047_s27 = smov 384   ;;  %s2048_s28 = smov 24  }
 0x496   :  { %1795 = dma.vmem_to_hbm [thread:$0]  %s1790_s20, 768, %s2315_s6, [#allocation4], %s2047_s27, %s2047_s27, %s2048_s28  }
 0x497   :  { %2024 = dma.done.wait [#allocation4], 768  }
 0x498   :  { %2025 = vsyncadd [#allocation4], 4294966528 }
 0x499   :  { %1799 = vsyncpa [#allocation3], 1 }
 0x49a   :  { %1800 = vsyncpa [#allocation6], 1 }
 0x49b   :  { %1801 = vsyncpa [#allocation4], 1 }

</bundles_post_ra>
